<compile_context>
chip_gen: v7x
topology: tpu7x:2x2x1
jax: 0.10.0
libtpu: 0.0.40
codegen_flags: <defaults>
</compile_context>

<pallas_src>
import jax
import jax.numpy as jnp
from jax.experimental import pallas as pl
from jax.experimental.pallas import tpu as pltpu


def _relu_siren_kernel(w_relu_ref, w_sin_ref, x_ref, o_ref):
    # w_relu_ref: SMEM (1,)    f32 scalar weight
    # w_sin_ref : VMEM (1,dim) f32 per-feature frequency
    # x_ref     : VMEM (tile_rows, dim) native dtype
    x = x_ref[...].astype(jnp.float32)
    w_sin = w_sin_ref[...]                      # (1, dim) -> broadcasts over rows
    w_relu = w_relu_ref[0]                      # scalar from SMEM
    out = w_relu * jnp.maximum(x, 0.0) + jnp.sin(w_sin * x)
    o_ref[...] = out.astype(o_ref.dtype)


def relu_sirens_forward(x, w_sin, w_relu, *, tile_rows=8192,
                        block_budget_bytes=4 * 1024 * 1024):
    """x: (B, N, dim); w_sin: (dim,); w_relu: scalar ().  Returns x.dtype."""
    B, N, dim = x.shape
    rows = B * N
    x2d = x.reshape(rows, dim)                  # native dtype, no cast pass

    itemsize = jnp.dtype(x2d.dtype).itemsize
    sub = {4: 8, 2: 16, 1: 32}.get(itemsize, 8)     # min sublane tile per dtype

    # --- Tile-row selection --------------------------------------------------
    # Cap by a per-block VMEM budget; double-buffered in+out blocks stay well
    # under the explicit vmem limit below.
    bytes_per_row = max(dim * itemsize, 1)
    max_rows_for_vmem = max(sub, (block_budget_bytes // bytes_per_row) // sub * sub)
    tile_rows = max(sub, min(tile_rows, max_rows_for_vmem))
    # Never use a block taller than the (sublane-rounded) input.
    tile_rows = min(tile_rows, pl.cdiv(rows, sub) * sub)
    # v7x megacore: aim for several grid steps per TensorCore on larger inputs.
    while tile_rows > 512 and pl.cdiv(rows, tile_rows) < 8:
        tile_rows //= 2
    tile_rows = max(sub, (tile_rows // sub) * sub)

    num_blocks = pl.cdiv(rows, tile_rows)       # ragged last block is masked

    # Tiny parameter tensors: cheap to cast on host.
    w_sin_2d = jnp.reshape(w_sin, (1, dim)).astype(jnp.float32)
    w_relu_1d = jnp.reshape(w_relu, (1,)).astype(jnp.float32)

    cost = pl.CostEstimate(
        flops=4 * rows * dim,
        transcendentals=rows * dim,
        bytes_accessed=2 * rows * dim * itemsize,
    )

    out2d = pl.pallas_call(
        _relu_siren_kernel,
        out_shape=jax.ShapeDtypeStruct((rows, dim), x2d.dtype),
        grid_spec=pl.GridSpec(
            grid=(num_blocks,),
            in_specs=[
                # Scalar weight on the scalar path (SMEM), untiled.
                pl.BlockSpec(memory_space=pltpu.MemorySpace.SMEM),
                # Per-feature frequency: same (1, dim) block every step.
                pl.BlockSpec((1, dim), lambda i: (0, 0)),
                # Input rows: big blocks, full-dim last axis (no lane padding).
                pl.BlockSpec((tile_rows, dim), lambda i: (i, 0)),
            ],
            out_specs=pl.BlockSpec((tile_rows, dim), lambda i: (i, 0)),
        ),
        compiler_params=pltpu.CompilerParams(
            dimension_semantics=("parallel",),
            vmem_limit_bytes=32 * 1024 * 1024,
        ),
        cost_estimate=cost,
    )(w_relu_1d, w_sin_2d, x2d)

    return out2d.reshape(B, N, dim)


if __name__ == "__main__":
    key = jax.random.PRNGKey(0)
    k_x, k_wsin, k_wrelu = jax.random.split(key, 3)

    B, N, dim = 2, 8, 128
    x = jax.random.normal(k_x, (B, N, dim), dtype=jnp.float32)

    # Deterministic "parameter" init (nn.Embedding default is N(0, 1)).
    w_sin = jax.random.normal(k_wsin, (dim,), dtype=jnp.float32)
    w_relu = jax.random.normal(k_wrelu, (), dtype=jnp.float32)

    out = relu_sirens_forward(x, w_sin, w_relu)
    out = jax.block_until_ready(out)

    # Pure-JAX reference for correctness.
    ref = w_relu * jnp.maximum(x, 0.0) + jnp.sin(w_sin[None, None, :] * x)
    assert out.shape == x.shape
    assert out.dtype == x.dtype
    assert jnp.allclose(out, ref, atol=1e-5, rtol=1e-5), "mismatch vs reference"

    print("KERNEL_OK")
</pallas_src>

<mosaic_0001>
module attributes {stable_mosaic.version = 11 : i64} {
  func.func @_relu_siren_kernel(%arg0: i32, %arg1: memref<1xf32, #tpu.memory_space<smem>>, %arg2: memref<1x128xf32, #tpu.memory_space<vmem>>, %arg3: memref<16x128xf32, #tpu.memory_space<vmem>>, %arg4: memref<16x128xf32, #tpu.memory_space<vmem>>) attributes {dimension_semantics = [#tpu.dimension_semantics<parallel>], iteration_bounds = array<i64: 1>, scalar_prefetch = 0 : i64, scratch_operands = 0 : i64, tpu.core_type = #tpu.core_type<tc>, window_params = [{transform_indices = @transform_0, window_bounds = array<i64: 1>}, {pipeline_mode = #tpu.pipeline_mode<synchronous>, transform_indices = @transform_1, window_bounds = array<i64: 1, 128>}, {transform_indices = @transform_2, window_bounds = array<i64: 16, 128>}, {transform_indices = @transform_3, window_bounds = array<i64: 16, 128>}]} {
    %c0 = arith.constant 0 : index
    %c0_0 = arith.constant 0 : index
    %0 = vector.load %arg3[%c0, %c0_0] : memref<16x128xf32, #tpu.memory_space<vmem>>, vector<16x128xf32>
    %c0_1 = arith.constant 0 : index
    %c0_2 = arith.constant 0 : index
    %1 = vector.load %arg2[%c0_1, %c0_2] : memref<1x128xf32, #tpu.memory_space<vmem>>, vector<1x128xf32>
    %c0_3 = arith.constant 0 : index
    %2 = memref.load %arg1[%c0_3] : memref<1xf32, #tpu.memory_space<smem>>
    %cst = arith.constant 0.000000e+00 : f32
    %3 = vector.broadcast %cst : f32 to vector<16x128xf32>
    %4 = arith.maximumf %0, %3 : vector<16x128xf32>
    %5 = vector.broadcast %2 : f32 to vector<16x128xf32>
    %6 = arith.mulf %5, %4 : vector<16x128xf32>
    %7 = vector.broadcast %1 : vector<1x128xf32> to vector<16x128xf32>
    %8 = arith.mulf %7, %0 : vector<16x128xf32>
    %9 = math.sin %8 : vector<16x128xf32>
    %10 = arith.addf %6, %9 : vector<16x128xf32>
    %c0_4 = arith.constant 0 : index
    %c0_5 = arith.constant 0 : index
    %11 = vector.load %arg4[%c0_4, %c0_5] : memref<16x128xf32, #tpu.memory_space<vmem>>, vector<16x128xf32>
    tpu.vector_store %arg4[%c0_4, %c0_5], %10 {strides = array<i32>} : memref<16x128xf32, #tpu.memory_space<vmem>>, vector<16x128xf32>,
    return
  }
  func.func @transform_0(%arg0: i32) -> i32 {
    %c0_i32 = arith.constant 0 : i32
    %c0_i32_0 = arith.constant 0 : i32
    return %c0_i32 : i32
  }
  func.func @transform_1(%arg0: i32) -> (i32, i32) {
    %c0_i32 = arith.constant 0 : i32
    %c0_i32_0 = arith.constant 0 : i32
    %c0_i32_1 = arith.constant 0 : i32
    return %c0_i32, %c0_i32_0 : i32, i32
  }
  func.func @transform_2(%arg0: i32) -> (i32, i32) {
    %c0_i32 = arith.constant 0 : i32
    %c0_i32_0 = arith.constant 0 : i32
    return %arg0, %c0_i32 : i32, i32
  }
  func.func @transform_3(%arg0: i32) -> (i32, i32) {
    %c0_i32 = arith.constant 0 : i32
    %c0_i32_0 = arith.constant 0 : i32
    return %arg0, %c0_i32 : i32, i32
  }
}

</mosaic_0001>

<bundles_post_ra>
// kernel: tpu_custom_call.1
= control target key start
LH: loop header
LB: loop body
LE: loop exit
PB: predicated region body
PF: predicated region fallthrough
CT: control target
= control target key end

     0   :  { %9 = vsyncpa [#allocation4], 0  ;;  %s508_s0 = inlined_call_operand.<no memory space> [shape: f32[1], index: 0, kind: input, shape index: {}]   ;;  %s509_s1 = inlined_call_operand.vmem [shape: f32[1,128], index: 1, kind: input, shape index: {}]   ;;  %s510_s2 = inlined_call_operand.hbm [shape: f32[16,128], index: 2, kind: input, shape index: {}]   ;;  %s511_s3 = inlined_call_operand.hbm [shape: f32[16,128], index: 3, kind: output, shape index: {}]  }
   0x1   :  { %10 = vsyncpa [#allocation5], 0  ;;  %s359_s12 = smov [#allocation3]   ;;  %s311_s16 = scalar_lea.hbm %s510_s2, 256 }
   0x2   :  { %s20_s13 = sshll.u32 %s359_s12, 4  ;;  %p312_p0 = scmp.ne.s32.totalorder %s510_s2, %s311_s16  ;;  %s21_s13 = int_to_ptr.vmem [resolvable:$true] %s20_s13 }
   0x3   :  { %p315_p1 = scmp.lt.u32.totalorder %s311_s16, %s510_s2 }
   0x5   :  { %p317_p2 = pnand %p315_p1, %p312_p0 }
   0x7   :  { %320 = shalt.err (!%p317_p2)
}
   0x8   :  { %s321_s21 = scalar_lea.vmem %s21_s13, 256  ;;  %p326_p4 = scmp.lt.s32.totalorder %s21_s13, %s21_s13 }
   0x9   :  { %p322_p3 = scmp.ne.s32.totalorder %s21_s13, %s321_s21  ;;  %p327_p5 = scmp.lt.s32.totalorder %s321_s21, %s321_s21 }
   0xb   :  { %p328_p6 = por %p327_p5, %p326_p4 }
   0xd   :  { %p329_p7 = pnand %p328_p6, %p322_p3 }
   0xf   :  { %332 = shalt.err (!%p329_p7)
}
  0x10   :  { %s360_s22 = smov 128   ;;  %s361_s23 = smov 8  }
  0x11   :  { %26 = dma.hbm_to_vmem [thread:$0]  %s510_s2, 256, %s21_s13, [#allocation4], %s360_s22, %s360_s22, %s361_s23  }
  0x12   :  { %355 = dma.done.wait [#allocation4], 256  }
  0x13   :  { %356 = vsyncadd [#allocation4], 4294967040  ;;  %v404_v0 = vld [vmem:[#allocation3] sm:$0xff]  ;;  %v409_v2 = vld [vmem:[#allocation3 + $0x8] sm:$0xff]  ;;  %v362_v24 = vmov 683565275  }
  0x14   :  { %v276_v1 = vld [vmem:[%s509_s1] ss:$0 sm:$0xff]  ;;  %v363_v26 = vmov 2475754826   ;;  %v364_v28 = vmov 2131351028  }
  0x15   :  { %v412_v3 = vmul.f32 %v276_v1, %v404_v0  ;;  %v415_v4 = vmul.f32 %v276_v1, %v409_v2  ;;  %v365_v30 = vmov 2102212464   ;;  %v366_v32 = vmov 920167782  }
  0x16   :  { %v367_v40 = vmov 1326507024  }
  0x17   :  { %v47_v5 = vand.u32 2147483647, %v412_v3  ;;  %v50_v6 = vand.u32 2139095040, %v412_v3  ;;  %v154_v8 = vand.u32 2139095040, %v415_v4  ;;  %v151_v10 = vand.u32 2147483647, %v415_v4 }
  0x18   :  { %vm49_vm14 = vcmp.lt.s32.totalorder %v412_v3, 0 }
  0x19   :  { %v51_v7 = vshrl.u32 %v50_v6, 23  ;;  %v54_v9 = vand.u32 8388607, %v47_v5  ;;  %v155_v12 = vshrl.u32 %v154_v8, 23  ;;  %v425_v16 = vand.u32 8388607, %v151_v10 }
  0x1a   :  { %vm48_vm15 = vcmp.le.f32.partialorder %v47_v5, 0.7853982 }
  0x1b   :  { %v277_v11 = vadd.s32 4294967169, %v51_v7  ;;  %v281_v14 = vadd.s32 4294967169, %v155_v12  ;;  %v55_v15 = vor.u32 8388608, %v54_v9  ;;  %v159_v22 = vor.u32 8388608, %v425_v16 }
  0x1d   :  { %v57_v13 = vadd.s32 1, %v277_v11  ;;  %v161_v17 = vadd.s32 1, %v281_v14  ;;  %v427_v21 = vshll.u32 %v55_v15, 8 }
  0x1f   :  { %vm58_vm0 = vcmp.gt.s32.totalorder %v57_v13, 0  ;;  %vm162_vm1 = vcmp.gt.s32.totalorder %v161_v17, 0 }
  0x20   :  { %v59_v18 = vsel %vm58_vm0, %v57_v13, 0  ;;  %v163_v34 = vsel %vm162_vm1, %v161_v17, 0  ;;  %vm153_vm0 = vcmp.lt.s32.totalorder %v415_v4, 0  ;;  %vm477_vm1 = vcmp.le.f32.partialorder %v151_v10, 0.7853982 }
  0x21   :  { %v60_v19 = vshrl.u32 %v59_v18, 5  ;;  %v61_v20 = vand.u32 31, %v59_v18  ;;  %v164_v47 = vshrl.u32 %v163_v34, 5  ;;  %v165_v48 = vand.u32 31, %v163_v34 }
  0x23   :  { %v62_v23 = vsub.s32 32, %v61_v20  ;;  %v64_v25 = vshll.u32 %v362_v24, %v61_v20  ;;  %v67_v27 = vshll.u32 %v363_v26, %v61_v20  ;;  %v70_v29 = vshll.u32 %v364_v28, %v61_v20 }
  0x24   :  { %v73_v31 = vshll.u32 %v365_v30, %v61_v20  ;;  %v76_v33 = vshll.u32 %v366_v32, %v61_v20  ;;  %vm79_vm2 = vcmp.lt.s32.totalorder %v60_v19, 1  ;;  %vm80_vm3 = vcmp.lt.s32.totalorder %v60_v19, 2 }
  0x25   :  { %v63_v35 = vshrl.u32 %v362_v24, %v62_v23  ;;  %v65_v36 = vshrl.u32 %v363_v26, %v62_v23  ;;  %v68_v37 = vshrl.u32 %v364_v28, %v62_v23  ;;  %v71_v38 = vshrl.u32 %v365_v30, %v62_v23 }
  0x26   :  { %v74_v39 = vshrl.u32 %v366_v32, %v62_v23  ;;  %v77_v41 = vshrl.u32 %v367_v40, %v62_v23  ;;  %vm81_vm4 = vcmp.lt.s32.totalorder %v60_v19, 3  ;;  %vm82_vm5 = vcmp.lt.s32.totalorder %v60_v19, 4 }
  0x27   :  { %v66_v42 = vor.u32 %v65_v36, %v64_v25  ;;  %v69_v43 = vor.u32 %v68_v37, %v67_v27  ;;  %v72_v44 = vor.u32 %v71_v38, %v70_v29  ;;  %v166_v56 = vsub.s32 32, %v165_v48 }
  0x28   :  { %v75_v45 = vor.u32 %v74_v39, %v73_v31  ;;  %v78_v46 = vor.u32 %v77_v41, %v76_v33  ;;  %v168_v60 = vshll.u32 %v362_v24, %v165_v48  ;;  %v171_v12 = vshll.u32 %v363_v26, %v165_v48 }
  0x29   :  { %v83_v49 = vsel %vm79_vm2, %v63_v35, %v66_v42  ;;  %v84_v50 = vsel %vm82_vm5, %v72_v44, 2102212464  ;;  %v87_v51 = vsel %vm79_vm2, %v66_v42, %v69_v43  ;;  %v91_v52 = vsel %vm79_vm2, %v69_v43, %v72_v44 }
  0x2a   :  { %v85_v53 = vsel %vm81_vm4, %v69_v43, %v84_v50  ;;  %v88_v54 = vsel %vm82_vm5, %v75_v45, 920167782  ;;  %v92_v55 = vsel %vm82_vm5, %v78_v46, 1326507024  ;;  %v167_v1 = vshrl.u32 %v362_v24, %v166_v56 }
  0x2b   :  { %v86_v57 = vsel %vm80_vm3, %v83_v49, %v85_v53  ;;  %v89_v58 = vsel %vm81_vm4, %v72_v44, %v88_v54  ;;  %v93_v59 = vsel %vm81_vm4, %v75_v45, %v92_v55  ;;  %v169_v11 = vshrl.u32 %v363_v26, %v166_v56 }
  0x2c   :  { %v90_v61 = vsel %vm80_vm3, %v87_v51, %v89_v58  ;;  %v94_v62 = vsel %vm80_vm3, %v91_v52, %v93_v59  ;;  %v102_v63 = vmul.u32 %v427_v21, %v86_v57  ;;  %v172_v13 = vshrl.u32 %v364_v28, %v166_v56 }
  0x2d   :  { %v441_v6 = vmul.u32.u64.low %v427_v21, %v94_v62  ;;  %v442_v7 = vmul.u32.u64.high %v427_v21, %v94_v62, %v441_v6  ;;  %v445_v8 = vmul.u32.u64.low %v427_v21, %v90_v61  ;;  %v446_v9 = vmul.u32.u64.high %v427_v21, %v90_v61, %v445_v8 }
  0x2e   :  { %v174_v14 = vshll.u32 %v364_v28, %v165_v48  ;;  %v175_v15 = vshrl.u32 %v365_v30, %v166_v56  ;;  %v177_v17 = vshll.u32 %v365_v30, %v165_v48  ;;  %v178_v18 = vshrl.u32 %v366_v32, %v166_v56 }
  0x2f   :  { %v180_v19 = vshll.u32 %v366_v32, %v165_v48  ;;  %v170_v20 = vor.u32 %v169_v11, %v168_v60  ;;  %v173_v23 = vor.u32 %v172_v13, %v171_v12  ;;  %v181_v25 = vshrl.u32 %v367_v40, %v166_v56 }
  0x30   :  { %vm183_vm6 = vcmp.lt.s32.totalorder %v164_v47, 1  ;;  %vm104_vm7 = vc.u32 %v442_v7, %v445_v8  ;;  %v105_v24 = vadd.s32 1, %v446_v9  ;;  %v176_v27 = vor.u32 %v175_v15, %v174_v14 }
  0x31   :  { %v199_v21 = vshll.u32 %v159_v22, 8  ;;  %v179_v29 = vor.u32 %v178_v18, %v177_v17  ;;  %v182_v26 = vor.u32 %v181_v25, %v180_v19  ;;  %vm184_vm8 = vcmp.lt.s32.totalorder %v164_v47, 2 }
  0x32   :  { %vm185_vm9 = vcmp.lt.s32.totalorder %v164_v47, 3  ;;  %v106_v28 = vsel %vm104_vm7, %v105_v24, %v446_v9  ;;  %vm186_vm10 = vcmp.lt.s32.totalorder %v164_v47, 4  ;;  %v187_v30 = vsel %vm183_vm6, %v167_v1, %v170_v20 }
  0x33   :  { %v191_v31 = vsel %vm183_vm6, %v170_v20, %v173_v23  ;;  %v107_v32 = vadd.s32 %v106_v28, %v102_v63  ;;  %v188_v33 = vsel %vm186_vm10, %v176_v27, 2102212464  ;;  %v192_v34 = vsel %vm186_vm10, %v179_v29, 920167782 }
  0x34   :  { %v195_v35 = vsel %vm183_vm6, %v173_v23, %v176_v27  ;;  %v189_v36 = vsel %vm185_vm9, %v173_v23, %v188_v33  ;;  %v193_v37 = vsel %vm185_vm9, %v176_v27, %v192_v34  ;;  %v196_v16 = vsel %vm186_vm10, %v182_v26, 1326507024 }
  0x35   :  { %v108_v22 = vadd.s32 536870912, %v107_v32  ;;  %v194_v38 = vsel %vm184_vm8, %v191_v31, %v193_v37  ;;  %v197_v39 = vsel %vm185_vm9, %v179_v29, %v196_v16  ;;  %v190_v40 = vsel %vm184_vm8, %v187_v30, %v189_v36 }
  0x36   :  { %v198_v41 = vsel %vm184_vm8, %v195_v35, %v197_v39  ;;  %v459_v42 = vmul.u32.u64.low %v199_v21, %v194_v38  ;;  %v460_v43 = vmul.u32.u64.high %v199_v21, %v194_v38, %v459_v42  ;;  %v206_v49 = vmul.u32 %v199_v21, %v190_v40 }
  0x37   :  { %v109_v44 = vshrl.u32 %v108_v22, 30  ;;  %v462_v45 = vmul.u32.u64.low %v199_v21, %v198_v41  ;;  %v463_v46 = vmul.u32.u64.high %v199_v21, %v198_v41, %v462_v45  ;;  %v103_v60 = vadd.s32 %v445_v8, %v442_v7 }
  0x38   :  { %v209_v50 = vadd.s32 1, %v460_v43  ;;  %vm139_vm5 = vweird.f32 %v412_v3  ;;  %vm243_vm9 = vweird.f32 %v415_v4 }
  0x39   :  { %v110_v48 = vshll.u32 %v109_v44, 30  ;;  %vm208_vm11 = vc.u32 %v463_v46, %v459_v42  ;;  %v133_v25 = vsub.s32 4, %v109_v44  ;;  %v207_v7 = vadd.s32 %v459_v42, %v463_v46 }
  0x3a   :  { %v210_v52 = vsel %vm208_vm11, %v209_v50, %v460_v43 }
  0x3b   :  { %v111_v51 = vsub.s32 %v107_v32, %v110_v48  ;;  %v211_v54 = vadd.s32 %v210_v52, %v206_v49  ;;  %v134_v28 = vsel %vm49_vm14, %v133_v25, %v109_v44  ;;  %v34_v44 = vmax.f32 %v404_v0, 0.0 }
  0x3c   :  { %v136_v34 = vsel %vm48_vm15, 0, %v134_v28  ;;  %v36_v48 = vstv %s508_s0  ;;  %s368_s0 = smov [#allocation6]  }
  0x3d   :  { %v113_v53 = vsub.s32 0, %v111_v51  ;;  %v212_v55 = vadd.s32 536870912, %v211_v54  ;;  %v140_v22 = vadd.s32 3, %v136_v34  ;;  %v37_v52 = vmul.f32 %v36_v48, %v34_v44  ;;  %s264_s28 = sshll.u32 %s368_s0, 4  ;;  %s265_s28 = int_to_ptr.vmem [resolvable:$true] %s264_s28 }
  0x3e   :  { %s333_s29 = scalar_lea.vmem %s265_s28, 256  ;;  %p338_p9 = scmp.lt.s32.totalorder %s265_s28, %s265_s28 }
  0x3f   :  { %v278_v47 = vmin.u32 %v113_v53, %v111_v51  ;;  %v213_v57 = vshrl.u32 %v212_v55, 30  ;;  %v141_v41 = vand.u32 3, %v140_v22  ;;  %p334_p8 = scmp.ne.s32.totalorder %s265_s28, %s333_s29  ;;  %p339_p10 = scmp.lt.s32.totalorder %s333_s29, %s333_s29 }
  0x41   :  { %v115_v56 = vclz %v278_v47  ;;  %v214_v59 = vshll.u32 %v213_v57, 30  ;;  %v237_v39 = vsub.s32 4, %v213_v57  ;;  %vm146_vm2 = vcmp.eq.s32.totalorder %v141_v41, 2  ;;  %p340_p11 = por %p339_p10, %p338_p9 }
  0x42   :  { %vm143_vm3 = vcmp.eq.s32.totalorder %v141_v41, 0  ;;  %vm142_vm4 = vcmp.lt.s32.totalorder %v141_v41, 2 }
  0x43   :  { %v279_v58 = vadd.s32 4294967294, %v115_v56  ;;  %v215_v62 = vsub.s32 %v211_v54, %v214_v59  ;;  %v238_v43 = vsel %vm153_vm0, %v237_v39, %v213_v57  ;;  %v35_v59 = vmax.f32 %v409_v2, 0.0  ;;  %p341_p12 = pnand %p340_p11, %p334_p8 }
  0x44   :  { %v240_v10 = vsel %vm477_vm1, 0, %v238_v43 }
  0x45   :  { %vm280_vm12 = vcmp.lt.s32.totalorder %v279_v58, 0  ;;  %v217_v9 = vsub.s32 0, %v215_v62  ;;  %v244_v54 = vadd.s32 3, %v240_v10 }
  0x46   :  { %v118_v61 = vsel %vm280_vm12, 0, %v279_v58 }
  0x47   :  { %v119_v63 = vsub.s32 32, %v118_v61  ;;  %v120_v1 = vshll.u32 %v111_v51, %v118_v61  ;;  %v123_v6 = vsub.s32 4294967266, %v118_v61  ;;  %v282_v13 = vmin.u32 %v217_v9, %v215_v62 }
  0x48   :  { %v245_v58 = vand.u32 3, %v244_v54 }
  0x49   :  { %v121_v11 = vshrl.u32 %v103_v60, %v119_v63  ;;  %v124_v12 = vadd.s32 127, %v123_v6  ;;  %v219_v17 = vclz %v282_v13 }
  0x4a   :  { %vm250_vm6 = vcmp.eq.s32.totalorder %v245_v58, 2  ;;  %vm247_vm7 = vcmp.eq.s32.totalorder %v245_v58, 0  ;;  %vm246_vm8 = vcmp.lt.s32.totalorder %v245_v58, 2 }
  0x4b   :  { %v122_v14 = vor.u32 %v121_v11, %v120_v1  ;;  %v125_v15 = vshll.u32 %v124_v12, 23  ;;  %v283_v20 = vadd.s32 4294967294, %v219_v17  ;;  %v38_v1 = vmul.f32 %v36_v48, %v35_v59 }
  0x4d   :  { %v126_v18 = vor.u32 4788187, %v125_v15  ;;  %v129_v19 = vcvt.s32.f32 %v122_v14  ;;  %vm284_vm13 = vcmp.lt.s32.totalorder %v283_v20, 0 }
  0x4e   :  { %v222_v24 = vsel %vm284_vm13, 0, %v283_v20 }
  0x4f   :  { %v127_v23 = vand.u32 2147483647, %v126_v18  ;;  %v223_v27 = vsub.s32 32, %v222_v24  ;;  %v224_v21 = vshll.u32 %v215_v62, %v222_v24  ;;  %v227_v29 = vsub.s32 4294967266, %v222_v24 }
  0x51   :  { %v130_v8 = vmul.f32 %v129_v19, %v127_v23  ;;  %v225_v30 = vshrl.u32 %v207_v7, %v223_v27  ;;  %v228_v31 = vadd.s32 127, %v227_v29 }
  0x53   :  { %v131_v26 = vxor.u32 2147483648, %v130_v8  ;;  %v226_v35 = vor.u32 %v225_v30, %v224_v21  ;;  %v229_v36 = vshll.u32 %v228_v31, 23 }
  0x55   :  { %v132_v32 = vsel %vm49_vm14, %v131_v26, %v130_v8  ;;  %v230_v37 = vor.u32 4788187, %v229_v36  ;;  %v233_v16 = vcvt.s32.f32 %v226_v35 }
  0x56   :  { %v135_v33 = vsel %vm48_vm15, %v412_v3, %v132_v32 }
  0x57   :  { %303 = vcosq.f32 %v135_v33  ;;  %v231_v38 = vand.u32 2147483647, %v230_v37 }
  0x58   :  { %305 = vsinq.f32 %v135_v33 }
  0x59   :  { %v234_v40 = vmul.f32 %v233_v16, %v231_v38 }
  0x5b   :  { %v235_v42 = vxor.u32 2147483648, %v234_v40 }
  0x5d   :  { %v236_v45 = vsel %vm153_vm0, %v235_v42, %v234_v40 }
  0x5e   :  { %v239_v49 = vsel %vm477_vm1, %v415_v4, %v236_v45 }
  0x5f   :  { %307 = vcosq.f32 %v239_v49 }
  0x60   :  { %309 = vsinq.f32 %v239_v49 }
  0x61   :  { %v304_v46 = vpop.eup %303 }
  0x62   :  { %v306_v50 = vpop.eup %305  ;;  %v147_v51 = vxor.u32 2147483648, %v304_v46 }
  0x63   :  { %v144_v0 = vxor.u32 2147483648, %v306_v50 }
  0x64   :  { %v148_v53 = vsel %vm146_vm2, %v147_v51, %v306_v50 }
  0x65   :  { %v145_v47 = vsel %vm143_vm3, %v304_v46, %v144_v0 }
  0x66   :  { %v149_v55 = vsel %vm142_vm4, %v145_v47, %v148_v53 }
  0x67   :  { %v150_v56 = vsel %vm139_vm5, nan, %v149_v55 }
  0x68   :  { %v255_v57 = vadd.f32 %v150_v56, %v37_v52 }
  0x69   :  { %v308_v60 = vpop.eup %307 }
  0x6a   :  { %257 = vst [vmem:[#allocation6] sm:$0xff] %v255_v57  ;;  %v310_v61 = vpop.eup %309  ;;  %v251_v62 = vxor.u32 2147483648, %v308_v60 }
  0x6b   :  { %v248_v63 = vxor.u32 2147483648, %v310_v61 }
  0x6c   :  { %v252_v3 = vsel %vm250_vm6, %v251_v62, %v310_v61 }
  0x6d   :  { %v249_v6 = vsel %vm247_vm7, %v308_v60, %v248_v63 }
  0x6e   :  { %v253_v9 = vsel %vm246_vm8, %v249_v6, %v252_v3 }
  0x6f   :  { %v254_v11 = vsel %vm243_vm9, nan, %v253_v9 }
  0x70   :  { %v256_v12 = vadd.f32 %v254_v11, %v38_v1 }
  0x72   :  { %258 = vst [vmem:[#allocation6 + $0x8] sm:$0xff] %v256_v12 }
  0x73   :  { %344 = shalt.err (!%p341_p12)
}
  0x74   :  { %s345_s5 = scalar_lea.hbm %s511_s3, 256 }
  0x75   :  { %p346_p13 = scmp.ne.s32.totalorder %s511_s3, %s345_s5  ;;  %p349_p0 = scmp.lt.u32.totalorder %s345_s5, %s511_s3 }
  0x77   :  { %p351_p1 = pnand %p349_p0, %p346_p13 }
  0x79   :  { %354 = shalt.err (!%p351_p1)
}
  0x7a   :  { %270 = dma.vmem_to_hbm [thread:$0]  %s265_s28, 256, %s511_s3, [#allocation5], %s360_s22, %s360_s22, %s361_s23  }
  0x7b   :  { %357 = dma.done.wait [#allocation5], 256  }
  0x7c   :  { %358 = vsyncadd [#allocation5], 4294967040 }
  0x7d   :  { %274 = vsyncpa [#allocation4], 1 }
  0x7e   :  { %275 = vsyncpa [#allocation5], 1 }

</bundles_post_ra>
